<compile_context>
chip_gen: v7x
topology: tpu7x:2x2x1
jax: 0.10.0
libtpu: 0.0.40
codegen_flags: <defaults>
</compile_context>

<pallas_src>
import jax
import jax.numpy as jnp
from jax.experimental import pallas as pl
from jax.experimental.pallas import tpu as pltpu


def _cos_sim_kernel(q1_ref, q2_ref, cos_ref):
    """Per-tile |cos similarity|.

    q1_ref, q2_ref: (D, TILE_B) blocks (D = 4, batch on the lane axis).
    cos_ref:        (1, TILE_B) lane-dense output block.
    """
    d_dim = q1_ref.shape[0]

    dot = None
    s1 = None
    s2 = None
    # Unrolled D-reduction: 4 row multiply-adds on the VPU, no XLU reduce.
    for d in range(d_dim):
        a = q1_ref[d:d + 1, :].astype(jnp.float32)   # (1, TILE_B)
        b = q2_ref[d:d + 1, :].astype(jnp.float32)   # (1, TILE_B)
        if d == 0:
            dot = a * b
            s1 = a * a
            s2 = b * b
        else:
            dot = dot + a * b
            s1 = s1 + a * a
            s2 = s2 + b * b

    # denom_sq = (||q1|| * ||q2||)^2 ; torch sets norm_prod==0 -> 1e-8, i.e.
    # denom_sq==0 -> 1e-16.  dot is exactly 0 in that case, so cos stays 0.
    denom_sq = s1 * s2
    denom_sq = jnp.where(denom_sq == 0.0, jnp.float32(1e-16), denom_sq)

    # |dot| * rsqrt(denom_sq)  ==  |dot / (n1*n2)|  (rsqrt hits the EUP slot).
    cos_ref[...] = jnp.abs(dot) * jax.lax.rsqrt(denom_sq)


def four_vector_loss(q1: jax.Array, q2: jax.Array, *, tile_b_max: int = 8192) -> jax.Array:
    """Pallas-backed equivalent of FourVectorLoss.forward(q1, q2)."""
    assert q1.shape == q2.shape and q1.ndim == 2
    B, D = q1.shape

    # Lane-dense layout: batch on the lane axis -> (D, B).  Cheap layout
    # plumbing in the wrapper; no dtype cast (bf16 inputs stay bf16 over HBM).
    q1t = q1.T
    q2t = q2.T

    # Lane tile: multiple of 128, capped so each block stays tiny in VMEM
    # ((4, 8192) f32 = 128 KiB/buffer -> far under the scoped VMEM default).
    tile_b = min(tile_b_max, 128 * pl.cdiv(B, 128))
    b_pad = tile_b * pl.cdiv(B, tile_b)
    if b_pad != B:
        pad = b_pad - B
        # Zero-pad; padded columns produce cos=0 and are sliced off before the
        # arccos epilogue, so their content is irrelevant.
        q1t = jnp.pad(q1t, ((0, 0), (0, pad)))
        q2t = jnp.pad(q2t, ((0, 0), (0, pad)))

    grid = (b_pad // tile_b,)

    cos = pl.pallas_call(
        _cos_sim_kernel,
        out_shape=jax.ShapeDtypeStruct((1, b_pad), jnp.float32),
        grid=grid,
        in_specs=[
            pl.BlockSpec((D, tile_b), lambda i: (0, i)),
            pl.BlockSpec((D, tile_b), lambda i: (0, i)),
        ],
        out_specs=pl.BlockSpec((1, tile_b), lambda i: (0, i)),
        compiler_params=pltpu.CompilerParams(
            dimension_semantics=("parallel",)),
    )(q1t, q2t)

    cos = cos[0, :B]                          # drop padding, (B,)
    # Guard against |cos| > 1 by a few ULPs (would NaN in arccos).
    cos = jnp.minimum(cos, jnp.float32(1.0))

    # TODO(synk): fuse arccos + sum into the kernel (EUP slot is idle) once
    # Mosaic acos/atan2 lowering is verified; plain-JAX epilogue for now.
    return jnp.sum(jnp.arccos(cos)) / B


def _reference(q1, q2):
    """Pure-JAX reference mirroring the PyTorch forward."""
    q1 = q1.astype(jnp.float32)
    q2 = q2.astype(jnp.float32)
    dot = jnp.sum(q1 * q2, axis=1)
    nprod = jnp.linalg.norm(q1, axis=1) * jnp.linalg.norm(q2, axis=1)
    nprod = jnp.where(nprod == 0.0, 1e-8, nprod)
    cos = jnp.abs(dot / nprod)
    return jnp.sum(jnp.arccos(cos)) / q1.shape[0]


if __name__ == "__main__":
    key = jax.random.PRNGKey(0)
    k1, k2, k3, k4 = jax.random.split(key, 4)

    # Small case (matches the module's (batch, 4) four-vector inputs),
    # with one exact-zero row to exercise the norm_prod == 0 guard.
    B, D = 8, 4
    q1 = jax.random.normal(k1, (B, D), dtype=jnp.float32)
    q2 = jax.random.normal(k2, (B, D), dtype=jnp.float32)
    q2 = q2.at[3].set(0.0)

    loss = four_vector_loss(q1, q2)
    jax.block_until_ready(loss)
    ref = _reference(q1, q2)
    assert jnp.allclose(loss, ref, rtol=1e-5, atol=1e-5), (loss, ref)

    # Multi-tile case: exercises the batch grid (grid > 1) and padding path.
    B2 = 1000
    q1b = jax.random.normal(k3, (B2, D), dtype=jnp.float32)
    q2b = jax.random.normal(k4, (B2, D), dtype=jnp.float32)
    loss2 = four_vector_loss(q1b, q2b, tile_b_max=128)
    jax.block_until_ready(loss2)
    ref2 = _reference(q1b, q2b)
    assert jnp.allclose(loss2, ref2, rtol=1e-5, atol=1e-5), (loss2, ref2)

    print("KERNEL_OK")
</pallas_src>

<mosaic_0001>
module attributes {stable_mosaic.version = 11 : i64} {
  func.func @_cos_sim_kernel(%arg0: i32, %arg1: memref<4x128xf32, #tpu.memory_space<vmem>>, %arg2: memref<4x128xf32, #tpu.memory_space<vmem>>, %arg3: memref<1x128xf32, #tpu.memory_space<vmem>>) attributes {dimension_semantics = [#tpu.dimension_semantics<parallel>], iteration_bounds = array<i64: 1>, scalar_prefetch = 0 : i64, scratch_operands = 0 : i64, tpu.core_type = #tpu.core_type<tc>, window_params = [{transform_indices = @transform_0, window_bounds = array<i64: 4, 128>}, {transform_indices = @transform_1, window_bounds = array<i64: 4, 128>}, {transform_indices = @transform_2, window_bounds = array<i64: 1, 128>}]} {
    %c0 = arith.constant 0 : index
    %c0_0 = arith.constant 0 : index
    %0 = vector.load %arg1[%c0, %c0_0] : memref<4x128xf32, #tpu.memory_space<vmem>>, vector<1x128xf32>
    %c0_1 = arith.constant 0 : index
    %c0_2 = arith.constant 0 : index
    %1 = vector.load %arg2[%c0_1, %c0_2] : memref<4x128xf32, #tpu.memory_space<vmem>>, vector<1x128xf32>
    %2 = arith.mulf %0, %1 : vector<1x128xf32>
    %3 = arith.mulf %0, %0 : vector<1x128xf32>
    %4 = arith.mulf %1, %1 : vector<1x128xf32>
    %c1 = arith.constant 1 : index
    %c0_3 = arith.constant 0 : index
    %5 = vector.load %arg1[%c1, %c0_3] : memref<4x128xf32, #tpu.memory_space<vmem>>, vector<1x128xf32>
    %c1_4 = arith.constant 1 : index
    %c0_5 = arith.constant 0 : index
    %6 = vector.load %arg2[%c1_4, %c0_5] : memref<4x128xf32, #tpu.memory_space<vmem>>, vector<1x128xf32>
    %7 = arith.mulf %5, %6 : vector<1x128xf32>
    %8 = arith.addf %2, %7 : vector<1x128xf32>
    %9 = arith.mulf %5, %5 : vector<1x128xf32>
    %10 = arith.addf %3, %9 : vector<1x128xf32>
    %11 = arith.mulf %6, %6 : vector<1x128xf32>
    %12 = arith.addf %4, %11 : vector<1x128xf32>
    %c2 = arith.constant 2 : index
    %c0_6 = arith.constant 0 : index
    %13 = vector.load %arg1[%c2, %c0_6] : memref<4x128xf32, #tpu.memory_space<vmem>>, vector<1x128xf32>
    %c2_7 = arith.constant 2 : index
    %c0_8 = arith.constant 0 : index
    %14 = vector.load %arg2[%c2_7, %c0_8] : memref<4x128xf32, #tpu.memory_space<vmem>>, vector<1x128xf32>
    %15 = arith.mulf %13, %14 : vector<1x128xf32>
    %16 = arith.addf %8, %15 : vector<1x128xf32>
    %17 = arith.mulf %13, %13 : vector<1x128xf32>
    %18 = arith.addf %10, %17 : vector<1x128xf32>
    %19 = arith.mulf %14, %14 : vector<1x128xf32>
    %20 = arith.addf %12, %19 : vector<1x128xf32>
    %c3 = arith.constant 3 : index
    %c0_9 = arith.constant 0 : index
    %21 = vector.load %arg1[%c3, %c0_9] : memref<4x128xf32, #tpu.memory_space<vmem>>, vector<1x128xf32>
    %c3_10 = arith.constant 3 : index
    %c0_11 = arith.constant 0 : index
    %22 = vector.load %arg2[%c3_10, %c0_11] : memref<4x128xf32, #tpu.memory_space<vmem>>, vector<1x128xf32>
    %23 = arith.mulf %21, %22 : vector<1x128xf32>
    %24 = arith.addf %16, %23 : vector<1x128xf32>
    %25 = arith.mulf %21, %21 : vector<1x128xf32>
    %26 = arith.addf %18, %25 : vector<1x128xf32>
    %27 = arith.mulf %22, %22 : vector<1x128xf32>
    %28 = arith.addf %20, %27 : vector<1x128xf32>
    %29 = arith.mulf %26, %28 : vector<1x128xf32>
    %cst = arith.constant 0.000000e+00 : f32
    %30 = vector.broadcast %cst : f32 to vector<1x128xf32>
    %31 = arith.cmpf oeq, %29, %30 : vector<1x128xf32>
    %cst_12 = arith.constant 1.000000e-16 : f32
    %32 = vector.broadcast %cst_12 : f32 to vector<1x128xf32>
    %33 = arith.select %31, %32, %29 : vector<1x128xi1>, vector<1x128xf32>
    %34 = math.absf %24 : vector<1x128xf32>
    %35 = math.rsqrt %33 : vector<1x128xf32>
    %36 = arith.mulf %34, %35 : vector<1x128xf32>
    %c0_13 = arith.constant 0 : index
    %c0_14 = arith.constant 0 : index
    %37 = vector.load %arg3[%c0_13, %c0_14] : memref<1x128xf32, #tpu.memory_space<vmem>>, vector<1x128xf32>
    tpu.vector_store %arg3[%c0_13, %c0_14], %36 {strides = array<i32>} : memref<1x128xf32, #tpu.memory_space<vmem>>, vector<1x128xf32>,
    return
  }
  func.func @transform_0(%arg0: i32) -> (i32, i32) {
    %c0_i32 = arith.constant 0 : i32
    %c0_i32_0 = arith.constant 0 : i32
    return %c0_i32, %arg0 : i32, i32
  }
  func.func @transform_1(%arg0: i32) -> (i32, i32) {
    %c0_i32 = arith.constant 0 : i32
    %c0_i32_0 = arith.constant 0 : i32
    return %c0_i32, %arg0 : i32, i32
  }
  func.func @transform_2(%arg0: i32) -> (i32, i32) {
    %c0_i32 = arith.constant 0 : i32
    %c0_i32_0 = arith.constant 0 : i32
    return %c0_i32, %arg0 : i32, i32
  }
}

</mosaic_0001>

<bundles_post_ra>
// kernel: tpu_custom_call.1
= control target key start
LH: loop header
LB: loop body
LE: loop exit
PB: predicated region body
PF: predicated region fallthrough
CT: control target
= control target key end

     0   :  { %7 = vsyncpa [#allocation3], 0  ;;  %s219_s0 = inlined_call_operand.hbm [shape: f32[4,128], index: 0, kind: input, shape index: {}]   ;;  %s220_s1 = inlined_call_operand.hbm [shape: f32[4,128], index: 1, kind: input, shape index: {}]   ;;  %s221_s2 = inlined_call_operand.hbm [shape: f32[1,128], index: 2, kind: output, shape index: {}]  }
   0x1   :  { %8 = vsyncpa [#allocation6], 0 }
   0x2   :  { %9 = vsyncpa [#allocation4], 0  ;;  %s165_s9 = smov [#allocation2]   ;;  %s166_s11 = smov [#allocation5]  }
   0x3   :  { %s16_s10 = sshll.u32 %s165_s9, 4  ;;  %s26_s12 = sshll.u32 %s166_s11, 4  ;;  %s17_s10 = int_to_ptr.vmem [resolvable:$true] %s16_s10  ;;  %s27_s12 = int_to_ptr.vmem [resolvable:$true] %s26_s12 }
   0x4   :  { %s93_s15 = scalar_lea.hbm %s219_s0, 64 }
   0x5   :  { %p94_p0 = scmp.ne.s32.totalorder %s219_s0, %s93_s15  ;;  %p97_p1 = scmp.lt.u32.totalorder %s93_s15, %s219_s0 }
   0x7   :  { %p99_p2 = pnand %p97_p1, %p94_p0 }
   0x9   :  { %102 = shalt.err (!%p99_p2)
}
   0xa   :  { %s103_s20 = scalar_lea.vmem %s17_s10, 64  ;;  %p108_p4 = scmp.lt.s32.totalorder %s17_s10, %s17_s10 }
   0xb   :  { %p104_p3 = scmp.ne.s32.totalorder %s17_s10, %s103_s20  ;;  %p109_p5 = scmp.lt.s32.totalorder %s103_s20, %s103_s20 }
   0xd   :  { %p110_p6 = por %p109_p5, %p108_p4 }
   0xf   :  { %p111_p7 = pnand %p110_p6, %p104_p3 }
  0x11   :  { %114 = shalt.err (!%p111_p7)
}
  0x12   :  { %19 = dma.hbm_to_vmem [thread:$0]  %s219_s0, 64, %s17_s10, [#allocation3]  }
  0x13   :  { %s115_s25 = scalar_lea.hbm %s220_s1, 64 }
  0x14   :  { %p116_p8 = scmp.ne.s32.totalorder %s220_s1, %s115_s25  ;;  %p119_p9 = scmp.lt.u32.totalorder %s115_s25, %s220_s1 }
  0x16   :  { %p121_p10 = pnand %p119_p9, %p116_p8 }
  0x18   :  { %124 = shalt.err (!%p121_p10)
}
  0x19   :  { %s125_s30 = scalar_lea.vmem %s27_s12, 64  ;;  %p130_p12 = scmp.lt.s32.totalorder %s27_s12, %s27_s12 }
  0x1a   :  { %p126_p11 = scmp.ne.s32.totalorder %s27_s12, %s125_s30  ;;  %p131_p13 = scmp.lt.s32.totalorder %s125_s30, %s125_s30 }
  0x1c   :  { %p132_p0 = por %p131_p13, %p130_p12 }
  0x1e   :  { %p133_p1 = pnand %p132_p0, %p126_p11 }
  0x20   :  { %136 = shalt.err (!%p133_p1)
}
  0x21   :  { %29 = dma.hbm_to_vmem [thread:$0]  %s220_s1, 64, %s27_s12, [#allocation6]  }
  0x22   :  { %159 = dma.done.wait [#allocation3], 64  }
  0x23   :  { %160 = vsyncadd [#allocation3], 4294967232 }
  0x24   :  { %161 = dma.done.wait [#allocation6], 64  }
  0x25   :  { %162 = vsyncadd [#allocation6], 4294967232  ;;  %v36_v0 = vld [vmem:[#allocation2] sm:$0x1]  ;;  %v37_v1 = vld [vmem:[#allocation5] sm:$0x1] }
  0x26   :  { %v41_v2 = vld [vmem:[#allocation2 + $0x1] sm:$0x1]  ;;  %v39_v3 = vmul.f32 %v36_v0, %v36_v0  ;;  %v40_v4 = vmul.f32 %v37_v1, %v37_v1  ;;  %v42_v5 = vld [vmem:[#allocation5 + $0x1] sm:$0x1]  ;;  %v49_v7 = vld [vmem:[#allocation2 + $0x2] sm:$0x1]  ;;  %v38_v18 = vmul.f32 %v37_v1, %v36_v0 }
  0x27   :  { %v45_v6 = vmul.f32 %v41_v2, %v41_v2  ;;  %v50_v8 = vld [vmem:[#allocation5 + $0x2] sm:$0x1]  ;;  %v47_v9 = vmul.f32 %v42_v5, %v42_v5  ;;  %v53_v10 = vmul.f32 %v49_v7, %v49_v7  ;;  %v57_v11 = vld [vmem:[#allocation2 + $0x3] sm:$0x1]  ;;  %v58_v12 = vld [vmem:[#allocation5 + $0x3] sm:$0x1]  ;;  %v43_v19 = vmul.f32 %v42_v5, %v41_v2 }
  0x28   :  { %v55_v14 = vmul.f32 %v50_v8, %v50_v8  ;;  %v61_v15 = vmul.f32 %v57_v11, %v57_v11  ;;  %v63_v17 = vmul.f32 %v58_v12, %v58_v12  ;;  %v51_v25 = vmul.f32 %v50_v8, %v49_v7  ;;  %s167_s1 = smov [#allocation7]  }
  0x29   :  { %v46_v13 = vadd.f32 %v45_v6, %v39_v3  ;;  %v48_v16 = vadd.f32 %v47_v9, %v40_v4  ;;  %v44_v24 = vadd.f32 %v43_v19, %v38_v18  ;;  %v59_v28 = vmul.f32 %v58_v12, %v57_v11  ;;  %s78_s4 = sshll.u32 %s167_s1, 4  ;;  %s79_s4 = int_to_ptr.vmem [resolvable:$true] %s78_s4 }
  0x2a   :  { %s137_s5 = scalar_lea.vmem %s79_s4, 16  ;;  %s141_s6 = scalar_lea.vmem %s79_s4, 32 }
  0x2b   :  { %v54_v20 = vadd.f32 %v53_v10, %v46_v13  ;;  %v56_v21 = vadd.f32 %v55_v14, %v48_v16  ;;  %v52_v27 = vadd.f32 %v51_v25, %v44_v24  ;;  %p138_p2 = scmp.ne.s32.totalorder %s79_s4, %s137_s5  ;;  %p142_p3 = scmp.lt.s32.totalorder %s79_s4, %s79_s4 }
  0x2c   :  { %p143_p4 = scmp.lt.s32.totalorder %s141_s6, %s137_s5 }
  0x2d   :  { %v62_v22 = vadd.f32 %v61_v15, %v54_v20  ;;  %v64_v23 = vadd.f32 %v63_v17, %v56_v21  ;;  %v60_v30 = vadd.f32 %v59_v28, %v52_v27 }
  0x2e   :  { %p144_p5 = por %p143_p4, %p142_p3 }
  0x2f   :  { %v65_v26 = vmul.f32 %v64_v23, %v62_v22  ;;  %v68_v31 = vand.u32 2147483647, %v60_v30 }
  0x30   :  { %p145_p6 = pnand %p144_p5, %p138_p2 }
  0x31   :  { %vm66_vm0 = vcmp.eq.f32.partialorder %v65_v26, 0.0 }
  0x32   :  { %v67_v29 = vsel %vm66_vm0, 1e-16, %v65_v26 }
  0x33   :  { %91 = vrsqrt.f32 %v67_v29 }
  0x3d   :  { %v92_v32 = vpop.eup %91 }
  0x3e   :  { %v70_v33 = vmul.f32 %v92_v32, %v68_v31 }
  0x40   :  { %71 = vst [vmem:[#allocation7] sm:$0x1] %v70_v33 }
  0x41   :  { %148 = shalt.err (!%p145_p6)
}
  0x42   :  { %s149_s9 = scalar_lea.hbm %s221_s2, 16 }
  0x43   :  { %p150_p7 = scmp.ne.s32.totalorder %s221_s2, %s149_s9  ;;  %p153_p8 = scmp.lt.u32.totalorder %s149_s9, %s221_s2 }
  0x45   :  { %p155_p9 = pnand %p153_p8, %p150_p7 }
  0x47   :  { %158 = shalt.err (!%p155_p9)
}
  0x48   :  { %81 = dma.vmem_to_hbm [thread:$0]  %s79_s4, 16, %s221_s2, [#allocation4]  }
  0x49   :  { %163 = dma.done.wait [#allocation4], 16  }
  0x4a   :  { %164 = vsyncadd [#allocation4], 4294967280 }
  0x4b   :  { %85 = vsyncpa [#allocation3], 1 }
  0x4c   :  { %86 = vsyncpa [#allocation6], 1 }
  0x4d   :  { %87 = vsyncpa [#allocation4], 1 }

</bundles_post_ra>
